<compile_context>
chip_gen: v6e
topology: v6e:2x2x1
jax: 0.10.0
libtpu: 0.0.40
codegen_flags: <defaults>
</compile_context>

<pallas_src>
import functools

import jax
import jax.numpy as jnp
from jax import lax
from jax.experimental import pallas as pl
from jax.experimental.pallas import tpu as pltpu

_VMEM_LIMIT = 48 * 1024 * 1024         # safe on v5e/v6e (128 MiB) and v7x (64 MiB/TC)
_MXU_K = 256                           # any in_w <= K costs the same number of MXU passes
_P_BYTES_CAP = 2 * 1024 * 1024         # cap on the selection matrix while folding
_P_BYTES_MAX = 8 * 1024 * 1024         # beyond this, skip the matmul path entirely
_TARGET_BLOCK_BYTES = 16 * 1024 * 1024 # in+out bytes per grid step (single copy)
_MIN_GRID_STEPS = 8                    # >= 4 steps per TensorCore on v7x megacore


# ---------------------------------------------------------------------------
# Kernels
# ---------------------------------------------------------------------------

def _expand_full_kernel(p_ref, x_ref, o_ref, *, compute_dtype, precision):
    """o = x @ P, P a 0/1 selection matrix expanding both H and W. Exact."""
    x = x_ref[...].astype(compute_dtype)
    y = jnp.dot(x, p_ref[...], preferred_element_type=jnp.float32,
                precision=precision)
    o_ref[...] = y.astype(o_ref.dtype)


def _expand_w_kernel(p_ref, x_ref, o_ref, *, s, k, w, compute_dtype, precision):
    """P expands only W; the s-fold H replication is done with lane-aligned
    static column-slice stores (requires s*w % 128 == 0).  Cuts MXU work by s
    with identical output bytes; bit-exact."""
    x = x_ref[...].astype(compute_dtype)
    y = jnp.dot(x, p_ref[...], preferred_element_type=jnp.float32,
                precision=precision).astype(o_ref.dtype)
    sw = s * w
    for m in range(k):
        chunk = y[:, m * sw:(m + 1) * sw]
        for j in range(s):
            base = m * s * sw + j * sw
            o_ref[:, base:base + sw] = chunk


def _expand_broadcast_kernel(x_ref, o_ref, *, s, k, w):
    """Exact copy-expansion with no MXU: fallback for integer/bool dtypes
    (v7x MXU has no int support; int32 is not exact through an f32 matmul)."""
    x = x_ref[...]                                        # (rb, k*w)
    rb = x.shape[0]
    xe = jnp.broadcast_to(x.reshape(rb, k, 1, w, 1), (rb, k, s, w, s))
    o_ref[...] = xe.reshape(rb, k * s * s * w)


# ---------------------------------------------------------------------------
# Tiling heuristics
# ---------------------------------------------------------------------------

def _pick_row_fold(n_rows, w, s, itemsize):
    """Smallest divisor k of n_rows making the folded input row lane-dense
    (k*w >= 128), capped at the MXU contraction dim and a selection-matrix
    byte budget.  Falls back to the largest feasible divisor otherwise."""
    k_hi = min(n_rows, max(1, _MXU_K // max(1, w)))
    best = 1
    for k in range(1, k_hi + 1):
        if n_rows % k:
            continue
        if k > 1 and (k * w > _MXU_K or
                      (k * w) * (k * s * s * w) * itemsize > _P_BYTES_CAP):
            break
        best = k
        if k * w >= 128:
            break
    return best


def _pick_block_rows(rtot, in_row_bytes, out_row_bytes, temp_row_bytes, p_bytes):
    """Fat rows per grid step: big blocks (amortize ~0.35us/step, push toward
    the HBM roofline plateau) but >= _MIN_GRID_STEPS steps so v7x megacore
    halves still pipeline, and everything double-buffered fits under the VMEM
    limit with headroom."""
    if rtot <= 8:
        return rtot                                  # single full block
    per_row = 2 * (in_row_bytes + out_row_bytes) + temp_row_bytes
    budget = _VMEM_LIMIT - 2 * p_bytes - (6 << 20)   # headroom for internal scratch
    rb_vmem = max(8, budget // max(1, per_row))
    rb_target = max(8, _TARGET_BLOCK_BYTES // max(1, in_row_bytes + out_row_bytes))
    rb_steps = max(1, rtot // _MIN_GRID_STEPS)
    rb = min(rb_vmem, rb_target, rb_steps, rtot)
    rb = max(8, rb - rb % 8)                         # sublane-aligned block rows
    return min(rb, rtot)


# ---------------------------------------------------------------------------
# Wrapper
# ---------------------------------------------------------------------------

@functools.partial(jax.jit, static_argnames="stride")
def upsample(x, stride=2):
    """Nearest-neighbor upsample by integer `stride` on an NCHW tensor."""
    assert x.ndim == 4
    B, C, H, W = x.shape
    s = int(stride)
    assert s >= 1
    if s == 1:
        return x

    dtype = x.dtype
    itemsize = jnp.dtype(dtype).itemsize
    n_rows = B * C * H                       # each row -> s*s*W contiguous out elems

    is_float = jnp.issubdtype(dtype, jnp.floating)
    if dtype == jnp.bfloat16:
        compute_dtype, precision = jnp.bfloat16, None           # bf16 MXU, exact for 0/1
    else:
        compute_dtype, precision = jnp.float32, lax.Precision.HIGHEST  # exact f32 (f16 promoted)
    compute_itemsize = jnp.dtype(compute_dtype).itemsize

    k = _pick_row_fold(n_rows, W, s, compute_itemsize)
    rtot = n_rows // k
    in_w = k * W
    out_w = k * s * s * W

    # --- path selection ------------------------------------------------------
    wexpand_ok = (s * W) % 128 == 0 and k * s <= 32   # lane-aligned replicated stores
    rep = s if wexpand_ok else s * s
    pw = k * rep * W                                  # selection-matrix width
    p_bytes = in_w * pw * compute_itemsize
    use_matmul = is_float and p_bytes <= _P_BYTES_MAX
    use_wexpand = use_matmul and wexpand_ok

    if use_matmul:
        # 0/1 selection matrix: P[u, v] = 1 iff the two indices address the same
        # source element (u//W picks the folded sub-row, (v % (s*W))//s the W pos).
        u = jnp.arange(in_w)[:, None]
        v = jnp.arange(pw)[None, :]
        p = ((u // W == v // (rep * W)) &
             ((u % W) == (v % (s * W)) // s)).astype(compute_dtype)
        temp_row_bytes = pw * 4                       # f32 MXU result per fat row
        if use_wexpand:
            kernel = functools.partial(_expand_w_kernel, s=s, k=k, w=W,
                                       compute_dtype=compute_dtype,
                                       precision=precision)
        else:
            kernel = functools.partial(_expand_full_kernel,
                                       compute_dtype=compute_dtype,
                                       precision=precision)
        # P is grid-invariant (index_map always (0,0)) -> fetched once, reused.
        extra_in_specs = [pl.BlockSpec((in_w, pw), lambda g: (0, 0))]
        extra_args = (p,)
    else:
        p_bytes = 0
        temp_row_bytes = out_w * itemsize             # broadcast intermediate
        kernel = functools.partial(_expand_broadcast_kernel, s=s, k=k, w=W)
        extra_in_specs = []
        extra_args = ()

    x2 = x.reshape(rtot, in_w)                        # contiguous view -> free

    rb = _pick_block_rows(rtot, in_w * itemsize, out_w * itemsize,
                          temp_row_bytes, p_bytes)
    grid = (pl.cdiv(rtot, rb),)

    out2 = pl.pallas_call(
        kernel,
        out_shape=jax.ShapeDtypeStruct((rtot, out_w), dtype),
        grid_spec=pltpu.PrefetchScalarGridSpec(
            num_scalar_prefetch=0,
            grid=grid,
            in_specs=extra_in_specs + [pl.BlockSpec((rb, in_w), lambda g: (g, 0))],
            out_specs=pl.BlockSpec((rb, out_w), lambda g: (g, 0)),
        ),
        compiler_params=pltpu.CompilerParams(
            dimension_semantics=("parallel",),        # v7x megacore splits the grid
            vmem_limit_bytes=_VMEM_LIMIT,
        ),
    )(*extra_args, x2)

    return out2.reshape(B, C, H * s, W * s)           # contiguous view -> free


if __name__ == "__main__":
    key = jax.random.PRNGKey(0)
    B, C, H, W = 2, 4, 16, 16
    stride = 2
    x = jax.random.normal(key, (B, C, H, W), dtype=jnp.float32)

    out = upsample(x, stride=stride)
    out = jax.block_until_ready(out)

    # Reference: nearest-neighbor repeat along H and W (matches torch view/expand).
    ref = jnp.repeat(jnp.repeat(x, stride, axis=2), stride, axis=3)
    assert out.shape == (B, C, H * stride, W * stride)
    assert out.dtype == x.dtype
    assert bool(jnp.allclose(out, ref, rtol=1e-6, atol=1e-6))

    print("KERNEL_OK")
</pallas_src>

<mosaic_0001>
module attributes {stable_mosaic.version = 11 : i64} {
  func.func @_expand_full_kernel(%arg0: i32, %arg1: memref<128x512xf32, #tpu.memory_space<vmem>>, %arg2: memref<8x128xf32, #tpu.memory_space<vmem>>, %arg3: memref<8x512xf32, #tpu.memory_space<vmem>>) attributes {dimension_semantics = [#tpu.dimension_semantics<parallel>], iteration_bounds = array<i64: 2>, scalar_prefetch = 0 : i64, scratch_operands = 0 : i64, tpu.core_type = #tpu.core_type<tc>, window_params = [{pipeline_mode = #tpu.pipeline_mode<synchronous>, transform_indices = @transform_0, window_bounds = array<i64: 128, 512>}, {transform_indices = @transform_1, window_bounds = array<i64: 8, 128>}, {transform_indices = @transform_2, window_bounds = array<i64: 8, 512>}]} {
    %c0 = arith.constant 0 : index
    %c0_0 = arith.constant 0 : index
    %0 = vector.load %arg2[%c0, %c0_0] : memref<8x128xf32, #tpu.memory_space<vmem>>, vector<8x128xf32>
    %c0_1 = arith.constant 0 : index
    %c0_2 = arith.constant 0 : index
    %1 = vector.load %arg1[%c0_1, %c0_2] : memref<128x512xf32, #tpu.memory_space<vmem>>, vector<128x512xf32>
    %cst = arith.constant dense<0.000000e+00> : vector<8x512xf32>
    %2 = tpu.matmul %0, %1, %cst {dimension_numbers = #tpu.dot_dimension_numbers<[1], [0], [0], [1], [0, 0, 1, 1], [], []>, precision = #tpu.contract_precision<fp32>} : vector<8x128xf32>, vector<128x512xf32>, vector<8x512xf32> -> vector<8x512xf32>
    %c0_3 = arith.constant 0 : index
    %c0_4 = arith.constant 0 : index
    %3 = vector.load %arg3[%c0_3, %c0_4] : memref<8x512xf32, #tpu.memory_space<vmem>>, vector<8x512xf32>
    tpu.vector_store %arg3[%c0_3, %c0_4], %2 {strides = array<i32>} : memref<8x512xf32, #tpu.memory_space<vmem>>, vector<8x512xf32>,
    return
  }
  func.func @transform_0(%arg0: i32) -> (i32, i32) {
    %c0_i32 = arith.constant 0 : i32
    %c0_i32_0 = arith.constant 0 : i32
    %c0_i32_1 = arith.constant 0 : i32
    return %c0_i32, %c0_i32_0 : i32, i32
  }
  func.func @transform_1(%arg0: i32) -> (i32, i32) {
    %c0_i32 = arith.constant 0 : i32
    %c0_i32_0 = arith.constant 0 : i32
    return %arg0, %c0_i32 : i32, i32
  }
  func.func @transform_2(%arg0: i32) -> (i32, i32) {
    %c0_i32 = arith.constant 0 : i32
    %c0_i32_0 = arith.constant 0 : i32
    return %arg0, %c0_i32 : i32, i32
  }
}

</mosaic_0001>

<bundles_post_ra>
// kernel: upsample.1
= control target key start
LH: loop header
LB: loop body
LE: loop exit
PB: predicated region body
PF: predicated region fallthrough
CT: control target
= control target key end

     0   :  { %s2019_s9 = smov 0   ;;  %s3385_s0 = inlined_call_operand.vmem [shape: f32[128,512], index: 0, kind: input, shape index: {}]   ;;  %s3386_s1 = inlined_call_operand.vmem [shape: f32[16,128], index: 1, kind: input, shape index: {}]   ;;  %s3387_s2 = inlined_call_operand.vmem [shape: f32[16,512], index: 2, kind: output, shape index: {}]  }
   0x1 LB: > { %s1975_s10 = sadd.s32 4294967295, %s2001_s9   ;;  %p1979_p0 = scmp.ge.s32.totalorder %s2001_s9, 1  ;;  %s2001_s9 = sphi %s2019_s9, %s12_s9  }
   0x2   : > { %p111_p1 = scmp.lt.s32.totalorder %s2001_s9, 3 }
   0x4   : > { %p112_p2 = pnand %p1979_p0, %p111_p1 }
   0x6   : > { %115 = sbr.rel (%p112_p2) target bundleno = 429 (0x1ad), region = 28 }
   0xb   : > { %v203_v0 = vld [vmem:[%s3385_s0 + $0x1e8] sm:$0xff]  ;;  %v202_v1 = vld [vmem:[%s3385_s0 + $0x1e0] sm:$0xff]  ;;  %v3402_v9 = vmov 0.0   ;;  %p2268_p3 = scmp.lt.s32.totalorder %s1975_s10, 1 }
   0xc   : > { %v199_v2 = vld [vmem:[%s3385_s0 + $0x1c8] sm:$0xff]  ;;  %v2036_v3 = vand.u32 4294901760, %v203_v0  ;;  %v2038_v4 = vand.u32 4294901760, %v202_v1  ;;  %v198_v6 = vld [vmem:[%s3385_s0 + $0x1c0] sm:$0xff]  ;;  %302 = vmatprep.mubr.f32.mxu0 %v3402_v9  ;;  %538 = vmatprep.mubr.f32.mxu1 %v3402_v9 }
   0xd   : > { %v2040_v5 = vand.u32 4294901760, %v199_v2  ;;  %v195_v7 = vld [vmem:[%s3385_s0 + $0x1a8] sm:$0xff]  ;;  %v194_v8 = vld [vmem:[%s3385_s0 + $0x1a0] sm:$0xff]  ;;  %v2053_v10 = vand.u32 4294901760, %v198_v6  ;;  %s3706_s10 = smov (!%p2268_p3, %s1975_s10), 1 }
   0xe   : > { %v2055_v11 = vand.u32 4294901760, %v195_v7  ;;  %v2057_v12 = vand.u32 4294901760, %v194_v8  ;;  %v191_v13 = vld [vmem:[%s3385_s0 + $0x188] sm:$0xff]  ;;  %v190_v14 = vld [vmem:[%s3385_s0 + $0x180] sm:$0xff]  ;;  %207 = vmatprep.subr.mxu0 %v2036_v3  ;;  %v2076_v19 = vsub.f32 %v203_v0, %v2036_v3  ;;  %v2098_v24 = vsub.f32 %v202_v1, %v2038_v4  ;;  %s1980_s18 = sshll.u32 %s3706_s10, 3  ;;  %s1985_s14 = sshll.u32 %s3706_s10, 5 }
   0xf   : > { %v187_v15 = vld [vmem:[%s3385_s0 + $0x168] sm:$0xff]  ;;  %v2069_v16 = vand.u32 4294901760, %v191_v13  ;;  %v2071_v17 = vand.u32 4294901760, %v190_v14  ;;  %v2081_v20 = vld [vmem:[%s3385_s0 + $0x160] sm:$0xff]  ;;  %209 = vmatpush1.msra.mxu0 %v2038_v4  ;;  %v2104_v26 = vsub.f32 %v199_v2, %v2040_v5  ;;  %v2127_v32 = vsub.f32 %v198_v6, %v2053_v10  ;;  %s135_s25 = scalar_lea.vmem %s3386_s1, %s1980_s18  ;;  %s3376_s17 = scalar_lea.vmem %s3387_s2, %s1985_s14 }
  0x10   : > { %v2073_v18 = vand.u32 4294901760, %v187_v15  ;;  %v2086_v21 = vld [vmem:[%s3385_s0 + $0x148] sm:$0xff]  ;;  %v2091_v22 = vld [vmem:[%s3385_s0 + $0x140] sm:$0xff]  ;;  %v2095_v23 = vand.u32 4294901760, %v2081_v20  ;;  %211 = vmatprep.subr.mxu0 %v2040_v5  ;;  %v3401_v30 = vand.u32 4294901760, %v2076_v19  ;;  %v3400_v34 = vand.u32 4294901760, %v2098_v24 }
  0x11   : > { %v2101_v25 = vand.u32 4294901760, %v2086_v21  ;;  %v2109_v27 = vld [vmem:[%s3385_s0 + $0x128] sm:$0xff]  ;;  %v2114_v28 = vld [vmem:[%s3385_s0 + $0x120] sm:$0xff]  ;;  %v2124_v31 = vand.u32 4294901760, %v2091_v22  ;;  %213 = vmatpush1.msra.mxu0 %v2053_v10  ;;  %v3398_v35 = vand.u32 4294901760, %v2104_v26  ;;  %v2136_v36 = vsub.f32 %v195_v7, %v2055_v11 }
  0x12   : > { %v2119_v29 = vld [vmem:[%s3385_s0 + $0x108] sm:$0xff]  ;;  %v2130_v33 = vand.u32 4294901760, %v2109_v27  ;;  %v2139_v37 = vand.u32 4294901760, %v2114_v28  ;;  %v2144_v38 = vld [vmem:[%s3385_s0 + $0x100] sm:$0xff]  ;;  %215 = vmatprep.subr.mxu0 %v2055_v11  ;;  %v317_v39 = vsub.f32 %v2076_v19, %v3401_v30  ;;  %v3396_v40 = vand.u32 4294901760, %v2127_v32 }
  0x13   : > { %3514 = vst [vmem:[#allocation2_spill] sm:$0xff] %v2124_v31  ;;  %v2152_v41 = vsub.f32 %v194_v8, %v2057_v12  ;;  %v2155_v42 = vand.u32 4294901760, %v2119_v29  ;;  %217 = vmatpush1.msra.mxu0 %v2057_v12  ;;  %v323_v43 = vsub.f32 %v2098_v24, %v3400_v34  ;;  %v329_v44 = vsub.f32 %v2104_v26, %v3398_v35  ;;  %v2171_v47 = vld [vmem:[%s3385_s0 + $0xe8] sm:$0xff]  ;;  %v2184_v52 = vld [vmem:[%s3385_s0 + $0xe0] sm:$0xff] }
  0x14   : > { %3515 = vst [vmem:[#allocation3_spill] sm:$0xff] %v2130_v33  ;;  %3516 = vst [vmem:[#allocation4_spill] sm:$0xff] %v2139_v37  ;;  %v3394_v45 = vand.u32 4294901760, %v2136_v36  ;;  %v2166_v46 = vsub.f32 %v191_v13, %v2069_v16  ;;  %219 = vmatprep.subr.mxu0 %v2069_v16  ;;  %v318_v48 = vand.u32 4294901760, %v317_v39  ;;  %v335_v49 = vsub.f32 %v2127_v32, %v3396_v40  ;;  %v2194_v57 = vld [vmem:[%s3385_s0 + $0xc8] sm:$0xff]  ;;  %v2209_v62 = vld [vmem:[%s3385_s0 + $0xc0] sm:$0xff] }
  0x15   : > { %3517 = vst [vmem:[#allocation5_spill] sm:$0xff] %v2155_v42  ;;  %v3393_v50 = vand.u32 4294901760, %v2152_v41  ;;  %v2179_v51 = vand.u32 4294901760, %v2144_v38  ;;  %221 = vmatpush1.msra.mxu0 %v2071_v17  ;;  %v324_v53 = vand.u32 4294901760, %v323_v43  ;;  %v330_v54 = vand.u32 4294901760, %v329_v44  ;;  %v2224_v6 = vld [vmem:[%s3385_s0 + $0xa8] sm:$0xff] }
  0x16   : > { %v341_v55 = vsub.f32 %v2136_v36, %v3394_v45  ;;  %v3391_v56 = vand.u32 4294901760, %v2166_v46  ;;  %223 = vmatprep.subr.mxu0 %v2073_v18  ;;  %319 = vmatprep.subr.mxu1 %v318_v48  ;;  %v336_v58 = vand.u32 4294901760, %v335_v49  ;;  %v2201_v60 = vsub.f32 %v190_v14, %v2071_v17  ;;  %v2323_v45 = vld [vmem:[%s3385_s0 + $0x60] sm:$0xff]  ;;  %v2345_v40 = vld [vmem:[%s3385_s0 + $0x48] sm:$0xff] }
  0x17   : > { %3518 = vst [vmem:[#allocation6_spill] sm:$0xff] %v2179_v51  ;;  %v347_v59 = vsub.f32 %v2152_v41, %v3393_v50  ;;  %v2204_v61 = vand.u32 4294901760, %v2171_v47  ;;  %225 = vmatpush1.msra.mxu0 %v2095_v23  ;;  %325 = vmatpush1.msra.mxu1 %v324_v53  ;;  %v2216_v1 = vsub.f32 %v187_v15, %v2073_v18  ;;  %v2219_v2 = vand.u32 4294901760, %v2184_v52  ;;  %v2238_v15 = vld [vmem:[%s3385_s0 + $0xa0] sm:$0xff]  ;;  %v2372_v30 = vld [vmem:[%s3385_s0 + $0x28] sm:$0xff] }
  0x18   : > { %v342_v63 = vand.u32 4294901760, %v341_v55  ;;  %v353_v0 = vsub.f32 %v2166_v46, %v3391_v56  ;;  %227 = vmatprep.subr.mxu0 %v2101_v25  ;;  %331 = vmatprep.subr.mxu1 %v330_v54  ;;  %v3390_v8 = vand.u32 4294901760, %v2201_v60  ;;  %v2230_v13 = vsub.f32 %v2081_v20, %v2095_v23 }
  0x19   : > { %3519 = vst [vmem:[#allocation7_spill] sm:$0xff] %v2204_v61  ;;  %3520 = vst [vmem:[#allocation8_spill] sm:$0xff] %v2219_v2  ;;  %v348_v7 = vand.u32 4294901760, %v347_v59  ;;  %v2233_v14 = vand.u32 4294901760, %v2194_v57  ;;  %229 = vmatpush1.msra.mxu0 %v2124_v31  ;;  %337 = vmatpush1.msra.mxu1 %v336_v58  ;;  %v3388_v43 = vand.u32 4294901760, %v2216_v1  ;;  %v2244_v44 = vsub.f32 %v2086_v21, %v2101_v25  ;;  %v2264_v21 = vld [vmem:[%s3385_s0 + $0x88] sm:$0xff] }
  0x1a   : > { %v354_v39 = vand.u32 4294901760, %v353_v0  ;;  %v2247_v20 = vand.u32 4294901760, %v2209_v62  ;;  %231 = vmatprep.subr.mxu0 %v2130_v33  ;;  %343 = vmatprep.subr.mxu1 %v342_v63  ;;  %v359_v48 = vsub.f32 %v2201_v60, %v3390_v8  ;;  %v3389_v49 = vand.u32 4294901760, %v2230_v13 }
  0x1b   : > { %3521 = vst [vmem:[#allocation9_spill] sm:$0xff] %v2233_v14  ;;  %v2256_v53 = vsub.f32 %v2091_v22, %v2124_v31  ;;  %v2259_v54 = vand.u32 4294901760, %v2224_v6  ;;  %233 = vmatpush1.msra.mxu0 %v2139_v37  ;;  %349 = vmatpush1.msra.mxu1 %v348_v7  ;;  %v365_v22 = vsub.f32 %v2216_v1, %v3388_v43  ;;  %v3392_v55 = vand.u32 4294901760, %v2244_v44 }
  0x1c   : > { %3522 = vst [vmem:[#allocation10_spill] sm:$0xff] %v2247_v20  ;;  %v2279_v58 = vsub.f32 %v2109_v27, %v2130_v33  ;;  %v2282_v59 = vand.u32 4294901760, %v2238_v15  ;;  %235 = vmatprep.subr.mxu0 %v2155_v42  ;;  %355 = vmatprep.subr.mxu1 %v354_v39  ;;  %v360_v63 = vand.u32 4294901760, %v359_v48  ;;  %v371_v0 = vsub.f32 %v2230_v13, %v3389_v49  ;;  %v2296_v27 = vld [vmem:[%s3385_s0 + $0x80] sm:$0xff] }
  0x1d   : > { %3523 = vst [vmem:[#allocation11_spill] sm:$0xff] %v2259_v54  ;;  %v3395_v7 = vand.u32 4294901760, %v2256_v53  ;;  %v2291_v43 = vsub.f32 %v2114_v28, %v2139_v37  ;;  %237 = vmatpush1.msra.mxu0 %v2179_v51  ;;  %v366_v39 = vand.u32 4294901760, %v365_v22  ;;  %v377_v48 = vsub.f32 %v2244_v44, %v3392_v55  ;;  %v2309_v28 = vld [vmem:[%s3385_s0 + $0x68] sm:$0xff]  ;;  %v141_v33 = vld [vmem:[%s135_s25] sm:$0xff] }
  0x1e   : > { %3525 = vst [vmem:[#allocation12_spill] sm:$0xff] %v2282_v59  ;;  %v3397_v49 = vand.u32 4294901760, %v2279_v58  ;;  %v2304_v8 = vand.u32 4294901760, %v2264_v21  ;;  %361 = vmatpush1.msra.mxu1 %v360_v63  ;;  %239 = vmatprep.subr.mxu0 %v2204_v61  ;;  %v372_v56 = vand.u32 4294901760, %v371_v0  ;;  %v2318_v50 = vsub.f32 %v2119_v29, %v2155_v42 }
  0x1f   : > { %v383_v22 = vsub.f32 %v2256_v53, %v3395_v7  ;;  %v3399_v55 = vand.u32 4294901760, %v2291_v43  ;;  %367 = vmatprep.subr.mxu1 %v366_v39  ;;  %241 = vmatpush1.msra.mxu0 %v2219_v2  ;;  %v378_v63 = vand.u32 4294901760, %v377_v48  ;;  %v2336_v29 = vand.u32 4294901760, %v2296_v27 }
  0x20   : > { %3526 = vst [vmem:[#allocation13_spill] sm:$0xff] %v2304_v8  ;;  %v389_v0 = vsub.f32 %v2279_v58, %v3397_v49  ;;  %v2340_v7 = vsub.f32 %v2144_v38, %v2179_v51  ;;  %373 = vmatpush1.msra.mxu1 %v372_v56  ;;  %243 = vmatprep.subr.mxu0 %v2233_v14  ;;  %v3404_v49 = vand.u32 4294901760, %v2318_v50  ;;  %v2353_v35 = vand.u32 4294901760, %v2309_v28  ;;  %v2358_v38 = vld [vmem:[%s3385_s0 + $0x40] sm:$0xff] }
  0x21   : > { %3527 = vst [vmem:[#allocation14_spill] sm:$0xff] %v2336_v29  ;;  %v384_v39 = vand.u32 4294901760, %v383_v22  ;;  %v395_v48 = vsub.f32 %v2291_v43, %v3399_v55  ;;  %379 = vmatprep.subr.mxu1 %v378_v63  ;;  %245 = vmatpush1.msra.mxu0 %v2247_v20  ;;  %v2364_v55 = vsub.f32 %v2171_v47, %v2204_v61  ;;  %v2367_v34 = vand.u32 4294901760, %v2323_v45 }
  0x22   : > { %3528 = vst [vmem:[#allocation15_spill] sm:$0xff] %v2353_v35  ;;  %v390_v56 = vand.u32 4294901760, %v389_v0  ;;  %v3407_v22 = vand.u32 4294901760, %v2340_v7  ;;  %247 = vmatprep.subr.mxu0 %v2259_v54  ;;  %v401_v0 = vsub.f32 %v2318_v50, %v3404_v49  ;;  %v2380_v47 = vsub.f32 %v2184_v52, %v2219_v2  ;;  %v2401_v2 = vld [vmem:[%s3385_s0 + $0x20] sm:$0xff] }
  0x23   : > { %3529 = vst [vmem:[#allocation16_spill] sm:$0xff] %v2367_v34  ;;  %385 = vmatpush1.msra.mxu1 %v384_v39  ;;  %v396_v63 = vand.u32 4294901760, %v395_v48  ;;  %v2383_v9 = vand.u32 4294901760, %v2345_v40  ;;  %249 = vmatpush1.msra.mxu0 %v2282_v59  ;;  %v2393_v49 = vsub.f32 %v2194_v57, %v2233_v14  ;;  %v2396_v52 = vand.u32 4294901760, %v2358_v38  ;;  %v2415_v14 = vld [vmem:[%s3385_s0 + $0x8] sm:$0xff] }
  0x24   : > { %391 = vmatprep.subr.mxu1 %v390_v56  ;;  %v407_v39 = vsub.f32 %v2340_v7, %v3407_v22  ;;  %251 = vmatprep.subr.mxu0 %v2304_v8  ;;  %v402_v56 = vand.u32 4294901760, %v401_v0  ;;  %v2407_v48 = vsub.f32 %v2209_v62, %v2247_v20  ;;  %v2410_v57 = vand.u32 4294901760, %v2372_v30  ;;  %v2444_v22 = vld [vmem:[%s3385_s0] sm:$0xff] }
  0x25   : > { %3530 = vst [vmem:[#allocation17_spill] sm:$0xff] %v2383_v9  ;;  %3531 = vst [vmem:[#allocation18_spill] sm:$0xff] %v2396_v52  ;;  %397 = vmatpush1.msra.mxu1 %v396_v63  ;;  %253 = vmatpush1.msra.mxu0 %v2336_v29  ;;  %v3533_v61 = vand.u32 4294901760, %v2364_v55  ;;  %v2424_v62 = vsub.f32 %v2224_v6, %v2259_v54  ;;  %v3534_v20 = vand.u32 4294901760, %v2380_v47  ;;  %v2452_v42 = vand.u32 4294901760, %v2415_v14 }
  0x26   : > { %3532 = vst [vmem:[#allocation19_spill] sm:$0xff] %v2410_v57  ;;  %v408_v63 = vand.u32 4294901760, %v407_v39  ;;  %403 = vmatprep.subr.mxu1 %v402_v56  ;;  %255 = vmatprep.subr.mxu0 %v2353_v35  ;;  %v2439_v6 = vsub.f32 %v2238_v15, %v2282_v59  ;;  %v3536_v59 = vand.u32 4294901760, %v2407_v48  ;;  %v2468_v31 = vand.u32 4294901760, %v2444_v22 }
  0x27   : > { %v413_v0 = vsub.f32 %v2364_v55, %v3533_v61  ;;  %v419_v39 = vsub.f32 %v2380_v47, %v3534_v20  ;;  %v2435_v61 = vand.u32 4294901760, %v2401_v2  ;;  %257 = vmatpush1.msra.mxu0 %v2367_v34  ;;  %v3535_v20 = vand.u32 4294901760, %v2393_v49 }
  0x28   : > { %409 = vmatpush1.msra.mxu1 %v408_v63  ;;  %v3428_v54 = vand.u32 4294901760, %v2424_v62  ;;  %259 = vmatprep.subr.mxu0 %v2383_v9  ;;  %v431_v37 = vsub.f32 %v2407_v48, %v3536_v59  ;;  %v2472_v59 = vsub.f32 %v2296_v27, %v2336_v29 }
  0x29   : > { %v414_v56 = vand.u32 4294901760, %v413_v0  ;;  %v425_v51 = vsub.f32 %v2393_v49, %v3535_v20  ;;  %v420_v15 = vand.u32 4294901760, %v419_v39  ;;  %v2461_v0 = vsub.f32 %v2264_v21, %v2304_v8  ;;  %261 = vmatpush1.msra.mxu0 %v2396_v52 }
  0x2a   : > { %v437_v39 = vsub.f32 %v2424_v62, %v3428_v54  ;;  %v432_v63 = vand.u32 4294901760, %v431_v37  ;;  %263 = vmatprep.subr.mxu0 %v2410_v57  ;;  %v3537_v21 = vand.u32 4294901760, %v2439_v6  ;;  %v2481_v54 = vsub.f32 %v2309_v28, %v2353_v35 }
  0x2b   : > { %415 = vmatprep.subr.mxu1 %v414_v56  ;;  %v426_v20 = vand.u32 4294901760, %v425_v51  ;;  %v3431_v56 = vand.u32 4294901760, %v2461_v0  ;;  %265 = vmatpush1.msra.mxu0 %v2435_v61  ;;  %v3434_v27 = vand.u32 4294901760, %v2472_v59  ;;  %v2489_v37 = vsub.f32 %v2323_v45, %v2367_v34 }
  0x2c   : > { %421 = vmatpush1.msra.mxu1 %v420_v15  ;;  %v443_v51 = vsub.f32 %v2439_v6, %v3537_v21  ;;  %v438_v8 = vand.u32 4294901760, %v437_v39  ;;  %v2485_v15 = vand.u32 4294901760, %v141_v33  ;;  %267 = vmatprep.subr.mxu0 %v2452_v42  ;;  %v2498_v39 = vsub.f32 %v2345_v40, %v2383_v9 }
  0x2d   : > { %427 = vmatprep.subr.mxu1 %v426_v20  ;;  %v449_v28 = vsub.f32 %v2461_v0, %v3431_v56  ;;  %269 = vmatpush1.msra.mxu0 %v2468_v31  ;;  %v455_v45 = vsub.f32 %v2472_v59, %v3434_v27  ;;  %v2510_v56 = vsub.f32 %v2358_v38, %v2396_v52  ;;  %v3540_v40 = vand.u32 4294901760, %v2481_v54 }
  0x2e   : > { %3538 = vst [vmem:[#allocation20_spill] sm:$0xff] %v2485_v15  ;;  %433 = vmatpush1.msra.mxu1 %v432_v63  ;;  %v444_v21 = vand.u32 4294901760, %v443_v51  ;;  %v2505_v63 = vsub.f32 %v141_v33, %v2485_v15  ;;  %548 = vmatprep.subr.mxu0 %v2076_v19  ;;  %v3441_v9 = vand.u32 4294901760, %v2498_v39  ;;  %v2519_v33 = vsub.f32 %v2372_v30, %v2410_v57 }
  0x2f   : > { %439 = vmatprep.subr.mxu1 %v438_v8  ;;  %v450_v20 = vand.u32 4294901760, %v449_v28  ;;  %v461_v8 = vsub.f32 %v2481_v54, %v3540_v40  ;;  %v456_v27 = vand.u32 4294901760, %v455_v45  ;;  %v3542_v38 = vand.u32 4294901760, %v2489_v37 }
  0x30   : > { %3539 = vst [vmem:[#allocation21_spill] sm:$0xff] %v2505_v63  ;;  %445 = vmatpush1.msra.mxu1 %v444_v21  ;;  %v2522_v51 = vand.u32 4294901760, %v2505_v63  ;;  %v3442_v28 = vand.u32 4294901760, %v2510_v56  ;;  %v473_v52 = vsub.f32 %v2498_v39, %v3441_v9  ;;  %v3448_v34 = vand.u32 4294901760, %v2519_v33 }
  0x31   : > { %v467_v21 = vsub.f32 %v2489_v37, %v3542_v38  ;;  %451 = vmatprep.subr.mxu1 %v450_v20  ;;  %v462_v40 = vand.u32 4294901760, %v461_v8  ;;  %v2534_v30 = vsub.f32 %v2401_v2, %v2435_v61  ;;  %v2543_v8 = vsub.f32 %v2415_v14, %v2452_v42 }
  0x32   : > { %3541 = vst [vmem:[#allocation22_spill] sm:$0xff] %v2522_v51  ;;  %457 = vmatpush1.msra.mxu1 %v456_v27  ;;  %v306_v45 = vsub.f32 %v2505_v63, %v2522_v51  ;;  %v479_v20 = vsub.f32 %v2510_v56, %v3442_v28  ;;  %v474_v38 = vand.u32 4294901760, %v473_v52  ;;  %v485_v2 = vsub.f32 %v2519_v33, %v3448_v34  ;;  %v3558_v34 = vld [vmem:[#allocation13_spill] sm:$0xff] }
  0x33   : > { %3543 = vst [vmem:[#allocation23_spill] sm:$0xff] %v2534_v30  ;;  %v468_v57 = vand.u32 4294901760, %v467_v21  ;;  %463 = vmatprep.subr.mxu1 %v462_v40  ;;  %v3447_v27 = vand.u32 4294901760, %v2534_v30  ;;  %v2551_v9 = vsub.f32 %v2444_v22, %v2468_v31  ;;  %v3446_v51 = vand.u32 4294901760, %v2543_v8 }
  0x34   : > { %v2553_v21 = vand.u32 4294901760, %v306_v45  ;;  %v480_v28 = vand.u32 4294901760, %v479_v20  ;;  %v486_v14 = vand.u32 4294901760, %v485_v2  ;;  %v3547_v2 = vld [vmem:[#allocation2_spill] sm:$0xff] }
  0x35   : > { %3544 = vst [vmem:[#allocation24_spill] sm:$0xff] %v2551_v9  ;;  %469 = vmatpush1.msra.mxu1 %v468_v57  ;;  %v491_v52 = vsub.f32 %v2534_v30, %v3447_v27  ;;  %v3445_v40 = vand.u32 4294901760, %v2551_v9  ;;  %v497_v22 = vsub.f32 %v2543_v8, %v3446_v51  ;;  %v3556_v51 = vld [vmem:[#allocation11_spill] sm:$0xff]  ;;  %v3557_v27 = vld [vmem:[#allocation12_spill] sm:$0xff] }
  0x36   : > { %3545 = vst [vmem:[#allocation25_spill] sm:$0xff] %v2553_v21  ;;  %475 = vmatprep.subr.mxu1 %v474_v38  ;;  %308 = vmatmul.mubr.f32.vlgmr.msra.gmra.mxu0 %v2553_v21  ;;  %v3546_v38 = vmov 0.0   ;;  %v3559_v21 = vand.u32 4294901760, %v2076_v19  ;;  %v3567_v19 = vand.u32 4294901760, %v2136_v36 }
  0x37   : > { %481 = vmatpush1.msra.mxu1 %v480_v28  ;;  %551 = vmatpush1.msra.mxu0 %v2098_v24  ;;  %v492_v57 = vand.u32 4294901760, %v491_v52  ;;  %v503_v45 = vsub.f32 %v2551_v9, %v3445_v40  ;;  %v498_v20 = vand.u32 4294901760, %v497_v22  ;;  %v3549_v52 = vld [vmem:[#allocation4_spill] sm:$0xff]  ;;  %v3550_v22 = vld [vmem:[#allocation5_spill] sm:$0xff]  ;;  %v3555_v40 = vld [vmem:[#allocation10_spill] sm:$0xff] }
  0x38   : > { %487 = vmatprep.subr.mxu1 %v486_v14  ;;  %554 = vmatprep.subr.mxu0 %v2104_v26  ;;  %v3548_v14 = vld [vmem:[#allocation3_spill] sm:$0xff] }
  0x39   : > { %674 = vmatprep.mubr.f32.mxu0 %v3546_v38  ;;  %557 = vmatpush1.msra.mxu0 %v2127_v32  ;;  %v504_v28 = vand.u32 4294901760, %v503_v45  ;;  %v3552_v45 = vld [vmem:[#allocation7_spill] sm:$0xff] }
  0x3a   : > { %493 = vmatpush1.msra.mxu1 %v492_v57  ;;  %560 = vmatprep.subr.mxu0 %v2136_v36  ;;  %v3551_v57 = vld [vmem:[#allocation6_spill] sm:$0xff]  ;;  %v3573_v36 = vand.u32 4294901760, %v2230_v13 }
  0x3b   : > { %499 = vmatprep.subr.mxu1 %v498_v20  ;;  %563 = vmatpush1.msra.mxu0 %v2152_v41  ;;  %v3553_v20 = vld [vmem:[#allocation8_spill] sm:$0xff] }
  0x3c   : > { %505 = vmatpush1.msra.mxu1 %v504_v28  ;;  %566 = vmatprep.subr.mxu0 %v2166_v46  ;;  %v3554_v28 = vld [vmem:[#allocation9_spill] sm:$0xff] }
  0x3d   : > { %540 = vmatmul.mubr.f32.vlgmr.msra.gmra.mxu1 %v2485_v15  ;;  %569 = vmatpush1.msra.mxu0 %v2201_v60  ;;  %v3560_v15 = vld [vmem:[#allocation16_spill] sm:$0xff] }
  0x3e   : > { %684 = vmatprep.subr.mxu1 %v2036_v3  ;;  %572 = vmatprep.subr.mxu0 %v2216_v1 }
  0x3f   : > { %686 = vmatpush1.msra.mxu1 %v2038_v4  ;;  %575 = vmatpush1.msra.mxu0 %v2230_v13 }
  0x40   : > { %688 = vmatprep.subr.mxu1 %v2040_v5  ;;  %578 = vmatprep.subr.mxu0 %v2244_v44 }
  0x41   : > { %690 = vmatpush1.msra.mxu1 %v2053_v10  ;;  %581 = vmatpush1.msra.mxu0 %v2256_v53 }
  0x42   : > { %692 = vmatprep.subr.mxu1 %v2055_v11  ;;  %584 = vmatprep.subr.mxu0 %v2279_v58 }
  0x43   : > { %694 = vmatpush1.msra.mxu1 %v2057_v12  ;;  %587 = vmatpush1.msra.mxu0 %v2291_v43 }
  0x44   : > { %696 = vmatprep.subr.mxu1 %v2069_v16  ;;  %590 = vmatprep.subr.mxu0 %v2318_v50 }
  0x45   : > { %698 = vmatpush1.msra.mxu1 %v2071_v17  ;;  %593 = vmatpush1.msra.mxu0 %v2340_v7 }
  0x46   : > { %700 = vmatprep.subr.mxu1 %v2073_v18  ;;  %596 = vmatprep.subr.mxu0 %v2364_v55 }
  0x47   : > { %702 = vmatpush1.msra.mxu1 %v2095_v23  ;;  %599 = vmatpush1.msra.mxu0 %v2380_v47 }
  0x48   : > { %704 = vmatprep.subr.mxu1 %v2101_v25  ;;  %602 = vmatprep.subr.mxu0 %v2393_v49 }
  0x49   : > { %706 = vmatpush1.msra.mxu1 %v3547_v2  ;;  %605 = vmatpush1.msra.mxu0 %v2407_v48 }
  0x4a   : > { %708 = vmatprep.subr.mxu1 %v3548_v14  ;;  %608 = vmatprep.subr.mxu0 %v2424_v62 }
  0x4b   : > { %710 = vmatpush1.msra.mxu1 %v3549_v52  ;;  %611 = vmatpush1.msra.mxu0 %v2439_v6 }
  0x4c   : > { %712 = vmatprep.subr.mxu1 %v3550_v22  ;;  %614 = vmatprep.subr.mxu0 %v2461_v0 }
  0x4d   : > { %714 = vmatpush1.msra.mxu1 %v3551_v57  ;;  %617 = vmatpush1.msra.mxu0 %v2472_v59 }
  0x4e   : > { %716 = vmatprep.subr.mxu1 %v3552_v45  ;;  %620 = vmatprep.subr.mxu0 %v2481_v54 }
  0x4f   : > { %718 = vmatpush1.msra.mxu1 %v3553_v20  ;;  %623 = vmatpush1.msra.mxu0 %v2489_v37 }
  0x50   : > { %720 = vmatprep.subr.mxu1 %v3554_v28  ;;  %626 = vmatprep.subr.mxu0 %v2498_v39 }
  0x51   : > { %722 = vmatpush1.msra.mxu1 %v3555_v40  ;;  %629 = vmatpush1.msra.mxu0 %v2510_v56 }
  0x52   : > { %724 = vmatprep.subr.mxu1 %v3556_v51  ;;  %632 = vmatprep.subr.mxu0 %v2519_v33 }
  0x53   : > { %726 = vmatpush1.msra.mxu1 %v3557_v27  ;;  %635 = vmatpush1.msra.mxu0 %v2534_v30  ;;  %v3561_v27 = vand.u32 4294901760, %v2098_v24  ;;  %v3562_v30 = vld [vmem:[#allocation17_spill] sm:$0xff]  ;;  %v3568_v24 = vand.u32 4294901760, %v2152_v41  ;;  %v3574_v41 = vand.u32 4294901760, %v2244_v44 }
  0x54   : > { %728 = vmatprep.subr.mxu1 %v3558_v34  ;;  %638 = vmatprep.subr.mxu0 %v2543_v8  ;;  %v3563_v34 = vand.u32 4294901760, %v2104_v26  ;;  %v3569_v26 = vand.u32 4294901760, %v2166_v46  ;;  %v3575_v46 = vand.u32 4294901760, %v2256_v53  ;;  %v3585_v53 = vand.u32 4294901760, %v2439_v6 }
  0x55   : > { %730 = vmatpush1.msra.mxu1 %v2336_v29  ;;  %641 = vmatpush1.msra.mxu0 %v2551_v9  ;;  %v3564_v29 = vld [vmem:[#allocation18_spill] sm:$0xff]  ;;  %v3565_v9 = vand.u32 4294901760, %v2127_v32 }
  0x56   : > { %732 = vmatprep.subr.mxu1 %v2353_v35  ;;  %677 = vmatmul.mubr.f32.vlgmr.msra.gmra.mxu0 %v2505_v63  ;;  %v3566_v35 = vld [vmem:[#allocation19_spill] sm:$0xff]  ;;  %v3571_v32 = vld [vmem:[#allocation22_spill] sm:$0xff] }
  0x57   : > { %792 = vmatprep.subr.mxu0 %v3559_v21  ;;  %734 = vmatpush1.msra.mxu1 %v3560_v15 }
  0x58   : > { %796 = vmatpush1.msra.mxu0 %v3561_v27  ;;  %736 = vmatprep.subr.mxu1 %v3562_v30  ;;  %v3587_v27 = vand.u32 4294901760, %v2472_v59  ;;  %v188_v59 = vld [vmem:[%s3385_s0 + $0x170] sm:$0xff] }
  0x59   : > { %800 = vmatprep.subr.mxu0 %v3563_v34  ;;  %738 = vmatpush1.msra.mxu1 %v3564_v29  ;;  %v3572_v34 = vand.u32 4294901760, %v2216_v1 }
  0x5a   : > { %804 = vmatpush1.msra.mxu0 %v3565_v9  ;;  %740 = vmatprep.subr.mxu1 %v3566_v35  ;;  %v3570_v9 = vand.u32 4294901760, %v2201_v60  ;;  %v3576_v60 = vand.u32 4294901760, %v2279_v58 }
  0x5b   : > { %808 = vmatprep.subr.mxu0 %v3567_v19  ;;  %742 = vmatpush1.msra.mxu1 %v2435_v61  ;;  %v184_v19 = vld [vmem:[%s3385_s0 + $0x150] sm:$0xff] }
  0x5c   : > { %812 = vmatpush1.msra.mxu0 %v3568_v24  ;;  %744 = vmatprep.subr.mxu1 %v2452_v42  ;;  %v185_v24 = vld [vmem:[%s3385_s0 + $0x158] sm:$0xff] }
  0x5d   : > { %816 = vmatprep.subr.mxu0 %v3569_v26  ;;  %746 = vmatpush1.msra.mxu1 %v2468_v31 }
  0x5e   : > { %779 = vmatprep.mubr.f32.mxu1 %v3546_v38  ;;  %820 = vmatpush1.msra.mxu0 %v3570_v9 }
  0x5f   : > { %783 = vmatmul.mubr.f32.vlgmr.msra.gmra.mxu1 %v3571_v32  ;;  %824 = vmatprep.subr.mxu0 %v3572_v34  ;;  %v3593_v34 = vand.u32 4294901760, %v2510_v56  ;;  %v180_v56 = vld [vmem:[%s3385_s0 + $0x130] sm:$0xff] }
  0x60   : > { %958 = vmatprep.subr.mxu1 %v2036_v3  ;;  %828 = vmatpush1.msra.mxu0 %v3573_v36  ;;  %v3577_v3 = vand.u32 4294901760, %v2291_v43  ;;  %v201_v43 = vld [vmem:[%s3385_s0 + $0x1d8] sm:$0xff]  ;;  %v3595_v36 = vand.u32 4294901760, %v2519_v33 }
  0x61   : > { %960 = vmatpush1.msra.mxu1 %v2038_v4  ;;  %832 = vmatprep.subr.mxu0 %v3574_v41  ;;  %v3578_v4 = vand.u32 4294901760, %v2318_v50  ;;  %v3580_v50 = vand.u32 4294901760, %v2364_v55  ;;  %v2720_v58 = vand.u32 4294901760, %v201_v43 }
  0x62   : > { %962 = vmatprep.subr.mxu1 %v2040_v5  ;;  %836 = vmatpush1.msra.mxu0 %v3575_v46  ;;  %v205_v5 = vld [vmem:[%s3385_s0 + $0x1f8] sm:$0xff] }
  0x63   : > { %964 = vmatpush1.msra.mxu1 %v2053_v10  ;;  %840 = vmatprep.subr.mxu0 %v3576_v60  ;;  %v204_v10 = vld [vmem:[%s3385_s0 + $0x1f0] sm:$0xff]  ;;  %v2690_v1 = vand.u32 4294901760, %v205_v5  ;;  %v2794_v60 = vand.u32 4294901760, %v184_v19 }
  0x64   : > { %966 = vmatprep.subr.mxu1 %v2055_v11  ;;  %844 = vmatpush1.msra.mxu0 %v3577_v3  ;;  %v3579_v11 = vand.u32 4294901760, %v2340_v7  ;;  %v2692_v13 = vand.u32 4294901760, %v204_v10  ;;  %v192_v7 = vld [vmem:[%s3385_s0 + $0x190] sm:$0xff] }
  0x65   : > { %968 = vmatpush1.msra.mxu1 %v2057_v12  ;;  %848 = vmatprep.subr.mxu0 %v3578_v4  ;;  %v200_v12 = vld [vmem:[%s3385_s0 + $0x1d0] sm:$0xff]  ;;  %3597 = vst [vmem:[#allocation6_spill] sm:$0xff] %v2794_v60 }
  0x66   : > { %970 = vmatprep.subr.mxu1 %v2069_v16  ;;  %852 = vmatpush1.msra.mxu0 %v3579_v11  ;;  %v3581_v16 = vand.u32 4294901760, %v2380_v47  ;;  %v2700_v44 = vand.u32 4294901760, %v200_v12  ;;  %v2718_v55 = vsub.f32 %v204_v10, %v2692_v13  ;;  %v2726_v47 = vsub.f32 %v205_v5, %v2690_v1  ;;  %v3600_v4 = vld [vmem:[#allocation12_spill] sm:$0xff]  ;;  %v181_v11 = vld [vmem:[%s3385_s0 + $0x138] sm:$0xff] }
  0x67   : > { %972 = vmatpush1.msra.mxu1 %v2071_v17  ;;  %856 = vmatprep.subr.mxu0 %v3580_v50  ;;  %v3582_v17 = vand.u32 4294901760, %v2393_v49  ;;  %v3584_v49 = vand.u32 4294901760, %v2424_v62  ;;  %v2812_v5 = vand.u32 4294901760, %v185_v24  ;;  %v3603_v50 = vld [vmem:[#allocation13_spill] sm:$0xff] }
  0x68   : > { %974 = vmatprep.subr.mxu1 %v2073_v18  ;;  %860 = vmatpush1.msra.mxu0 %v3581_v16  ;;  %v3583_v18 = vand.u32 4294901760, %v2407_v48  ;;  %v3586_v48 = vand.u32 4294901760, %v2461_v0  ;;  %v2732_v62 = vsub.f32 %v200_v12, %v2700_v44  ;;  %v3588_v0 = vand.u32 4294901760, %v2481_v54 }
  0x69   : > { %976 = vmatpush1.msra.mxu1 %v2095_v23  ;;  %864 = vmatprep.subr.mxu0 %v3582_v17  ;;  %v197_v23 = vld [vmem:[%s3385_s0 + $0x1b8] sm:$0xff]  ;;  %v3462_v54 = vand.u32 4294901760, %v2726_v47  ;;  %3601 = vst [vmem:[#allocation7_spill] sm:$0xff] %v2812_v5  ;;  %v3602_v12 = vand.u32 4294901760, %v2543_v8 }
  0x6a   : > { %978 = vmatprep.subr.mxu1 %v2101_v25  ;;  %868 = vmatpush1.msra.mxu0 %v3583_v18  ;;  %v196_v25 = vld [vmem:[%s3385_s0 + $0x1b0] sm:$0xff]  ;;  %v2734_v6 = vand.u32 4294901760, %v197_v23  ;;  %v3459_v26 = vand.u32 4294901760, %v2732_v62 }
  0x6b   : > { %980 = vmatpush1.msra.mxu1 %v3547_v2  ;;  %872 = vmatprep.subr.mxu0 %v3584_v49  ;;  %v2739_v21 = vand.u32 4294901760, %v196_v25  ;;  %v193_v2 = vld [vmem:[%s3385_s0 + $0x198] sm:$0xff]  ;;  %v3604_v18 = vld [vmem:[#allocation24_spill] sm:$0xff]  ;;  %v2836_v49 = vand.u32 4294901760, %v180_v56 }
  0x6c   : > { %982 = vmatprep.subr.mxu1 %v3548_v14  ;;  %876 = vmatpush1.msra.mxu0 %v3585_v53  ;;  %v2747_v14 = vand.u32 4294901760, %v192_v7  ;;  %v2776_v9 = vsub.f32 %v197_v23, %v2734_v6  ;;  %v2824_v16 = vsub.f32 %v2732_v62, %v3459_v26  ;;  %v3605_v23 = vand.u32 4294901760, %v3604_v18  ;;  %v177_v53 = vld [vmem:[%s3385_s0 + $0x118] sm:$0xff] }
  0x6d   : > { %984 = vmatpush1.msra.mxu1 %v3549_v52  ;;  %880 = vmatprep.subr.mxu0 %v3586_v48  ;;  %v3590_v52 = vand.u32 4294901760, %v2489_v37  ;;  %v3591_v37 = vand.u32 4294901760, %v2498_v39  ;;  %v2782_v39 = vsub.f32 %v196_v25, %v2739_v21  ;;  %3606 = vst [vmem:[#allocation8_spill] sm:$0xff] %v2836_v49  ;;  %v3608_v48 = vld [vmem:[#allocation20_spill] sm:$0xff] }
  0x6e   : > { %986 = vmatprep.subr.mxu1 %v3550_v22  ;;  %884 = vmatpush1.msra.mxu0 %v3587_v27  ;;  %3589 = vst [vmem:[#allocation2_spill] sm:$0xff] %v2747_v14  ;;  %v189_v22 = vld [vmem:[%s3385_s0 + $0x178] sm:$0xff]  ;;  %v2790_v41 = vsub.f32 %v192_v7, %v2747_v14  ;;  %v3457_v17 = vand.u32 4294901760, %v2776_v9  ;;  %v3607_v7 = vld [vmem:[#allocation14_spill] sm:$0xff]  ;;  %v2845_v27 = vsub.f32 %v184_v19, %v2794_v60 }
  0x6f   : > { %988 = vmatpush1.msra.mxu1 %v3551_v57  ;;  %888 = vmatprep.subr.mxu0 %v3588_v0  ;;  %v3461_v57 = vand.u32 4294901760, %v2718_v55  ;;  %v2792_v46 = vand.u32 4294901760, %v189_v22  ;;  %v3456_v25 = vand.u32 4294901760, %v2782_v39  ;;  %v176_v0 = vld [vmem:[%s3385_s0 + $0x110] sm:$0xff]  ;;  %v161_v19 = vld [vmem:[%s3385_s0 + $0x98] sm:$0xff] }
  0x70   : > { %990 = vmatprep.subr.mxu1 %v3552_v45  ;;  %892 = vmatpush1.msra.mxu0 %v3590_v52  ;;  %v2761_v45 = vsub.f32 %v201_v43, %v2720_v58  ;;  %v2895_v18 = vand.u32 4294901760, %v176_v0 }
  0x71   : > { %992 = vmatpush1.msra.mxu1 %v3553_v20  ;;  %896 = vmatprep.subr.mxu0 %v3591_v37  ;;  %v2769_v20 = vand.u32 4294901760, %v193_v2  ;;  %3596 = vst [vmem:[#allocation5_spill] sm:$0xff] %v2792_v46  ;;  %v2810_v33 = vsub.f32 %v2718_v55, %v3461_v57  ;;  %v2854_v52 = vsub.f32 %v189_v22, %v2792_v46  ;;  %v3610_v37 = vld [vmem:[#allocation15_spill] sm:$0xff] }
  0x72   : > { %994 = vmatprep.subr.mxu1 %v3554_v28  ;;  %900 = vmatpush1.msra.mxu0 %v3593_v34  ;;  %v2784_v28 = vand.u32 4294901760, %v188_v59  ;;  %v3460_v10 = vand.u32 4294901760, %v2761_v45  ;;  %v2869_v22 = vsub.f32 %v185_v24, %v2812_v5  ;;  %v168_v24 = vld [vmem:[%s3385_s0 + $0xd0] sm:$0xff]  ;;  %3612 = vst [vmem:[#allocation11_spill] sm:$0xff] %v2895_v18 }
  0x73   : > { %3592 = vst [vmem:[#allocation3_spill] sm:$0xff] %v2769_v20  ;;  %996 = vmatpush1.msra.mxu1 %v3555_v40  ;;  %904 = vmatprep.subr.mxu0 %v3595_v36  ;;  %v3598_v40 = vld [vmem:[#allocation23_spill] sm:$0xff]  ;;  %v2828_v43 = vsub.f32 %v193_v2, %v2769_v20  ;;  %v2847_v2 = vand.u32 4294901760, %v181_v11  ;;  %v2921_v26 = vand.u32 4294901760, %v168_v24 }
  0x74   : > { %3594 = vst [vmem:[#allocation4_spill] sm:$0xff] %v2784_v28  ;;  %998 = vmatprep.subr.mxu1 %v3556_v51  ;;  %v3599_v3 = vand.u32 4294901760, %v3598_v40  ;;  %v2805_v51 = vsub.f32 %v2726_v47, %v3462_v54  ;;  %949 = vmatprep.mubr.f32.mxu0 %v3546_v38  ;;  %v2834_v8 = vsub.f32 %v188_v59, %v2784_v28  ;;  %v3458_v59 = vand.u32 4294901760, %v2790_v41  ;;  %v172_v40 = vld [vmem:[%s3385_s0 + $0xf0] sm:$0xff] }
  0x75   : > { %1000 = vmatpush1.msra.mxu1 %v3600_v4  ;;  %3609 = vst [vmem:[#allocation9_spill] sm:$0xff] %v2847_v2  ;;  %v2863_v36 = vsub.f32 %v2761_v45, %v3460_v10  ;;  %v2877_v4 = vsub.f32 %v2776_v9, %v3457_v17  ;;  %v2915_v17 = vsub.f32 %v181_v11, %v2847_v2  ;;  %3614 = vst [vmem:[#allocation17_spill] sm:$0xff] %v2921_v26 }
  0x76   : > { %908 = vmatpush1.msra.mxu0 %v3599_v3  ;;  %1002 = vmatprep.subr.mxu1 %v3603_v50  ;;  %v1173_v34 = vand.u32 4294901760, %v2805_v51  ;;  %v2879_v51 = vand.u32 4294901760, %v177_v53  ;;  %v2893_v50 = vsub.f32 %v2782_v39, %v3456_v25  ;;  %v169_v25 = vld [vmem:[%s3385_s0 + $0xd8] sm:$0xff]  ;;  %v3468_v10 = vand.u32 4294901760, %v2845_v27  ;;  %v164_v3 = vld [vmem:[%s3385_s0 + $0xb0] sm:$0xff] }
  0x77   : > { %912 = vmatprep.subr.mxu0 %v3602_v12  ;;  %1004 = vmatpush1.msra.mxu1 %v3607_v7  ;;  %v3463_v12 = vand.u32 4294901760, %v2828_v43  ;;  %v3464_v7 = vand.u32 4294901760, %v2834_v8  ;;  %v1197_v57 = vand.u32 4294901760, %v2877_v4  ;;  %v2941_v54 = vsub.f32 %v176_v0, %v2895_v18 }
  0x78   : > { %916 = vmatpush1.msra.mxu0 %v3605_v23  ;;  %1006 = vmatprep.subr.mxu1 %v3610_v37  ;;  %3611 = vst [vmem:[#allocation10_spill] sm:$0xff] %v2879_v51  ;;  %v173_v23 = vld [vmem:[%s3385_s0 + $0xf8] sm:$0xff]  ;;  %v2909_v37 = vand.u32 4294901760, %v172_v40 }
  0x79   : > { %951 = vmatmul.mubr.f32.vlgmr.msra.gmra.mxu0 %v3608_v48  ;;  %1062 = vmatprep.subr.mxu0 %v2690_v1  ;;  %v2932_v11 = vand.u32 4294901760, %v173_v23  ;;  %v2946_v4 = vsub.f32 %v2834_v8, %v3464_v7  ;;  %v3620_v7 = vand.u32 4294901760, %v2810_v33  ;;  %v3623_v33 = vand.u32 4294901760, %v2915_v17 }
  0x7a   : > { %1008 = vmatpush1.msra.mxu1 %v3560_v15  ;;  %1064 = vmatpush1.msra.mxu0 %v2692_v13  ;;  %v2888_v15 = vsub.f32 %v180_v56, %v2836_v49  ;;  %v3465_v56 = vand.u32 4294901760, %v2854_v52  ;;  %3613 = vst [vmem:[#allocation16_spill] sm:$0xff] %v2909_v37 }
  0x7b   : > { %1010 = vmatprep.subr.mxu1 %v3562_v30  ;;  %1066 = vmatprep.subr.mxu0 %v2720_v58  ;;  %v2906_v30 = vsub.f32 %v2790_v41, %v3458_v59  ;;  %v3466_v59 = vand.u32 4294901760, %v2869_v22  ;;  %3615 = vst [vmem:[#allocation18_spill] sm:$0xff] %v2932_v11  ;;  %v2996_v63 = vsub.f32 %v173_v23, %v2932_v11  ;;  %v157_v23 = vld [vmem:[%s3385_s0 + $0x78] sm:$0xff] }
  0x7c   : > { %1012 = vmatpush1.msra.mxu1 %v3564_v29  ;;  %1068 = vmatpush1.msra.mxu0 %v2700_v44  ;;  %v1185_v29 = vand.u32 4294901760, %v2863_v36  ;;  %v2935_v36 = vsub.f32 %v177_v53, %v2879_v51  ;;  %v165_v53 = vld [vmem:[%s3385_s0 + $0xb8] sm:$0xff]  ;;  %v2959_v0 = vsub.f32 %v2854_v52, %v3465_v56  ;;  %v2984_v56 = vsub.f32 %v2845_v27, %v3468_v10  ;;  %v156_v10 = vld [vmem:[%s3385_s0 + $0x70] sm:$0xff] }
  0x7d   : > { %1014 = vmatprep.subr.mxu1 %v3566_v35  ;;  %1070 = vmatprep.subr.mxu0 %v2734_v6  ;;  %v2930_v35 = vsub.f32 %v2828_v43, %v3463_v12  ;;  %v2948_v12 = vand.u32 4294901760, %v169_v25  ;;  %v2992_v32 = vand.u32 4294901760, %v165_v53 }
  0x7e   : > { %1016 = vmatpush1.msra.mxu1 %v2435_v61  ;;  %1072 = vmatpush1.msra.mxu0 %v2739_v21  ;;  %3616 = vst [vmem:[#allocation19_spill] sm:$0xff] %v2935_v36  ;;  %v1203_v61 = vand.u32 4294901760, %v2893_v50  ;;  %v2962_v50 = vsub.f32 %v172_v40, %v2909_v37  ;;  %v2979_v40 = vsub.f32 %v168_v24, %v2921_v26  ;;  %v3625_v24 = vand.u32 4294901760, %v2824_v16 }
  0x7f   : > { %1018 = vmatprep.subr.mxu1 %v2452_v42  ;;  %1074 = vmatprep.subr.mxu0 %v2769_v20  ;;  %3617 = vst [vmem:[#allocation23_spill] sm:$0xff] %v2948_v12  ;;  %v1215_v42 = vand.u32 4294901760, %v2906_v30  ;;  %v2976_v30 = vsub.f32 %v2869_v22, %v3466_v59  ;;  %v1209_v59 = vand.u32 4294901760, %v2930_v35  ;;  %3619 = vst [vmem:[#allocation13_spill] sm:$0xff] %v2992_v32  ;;  %v3627_v16 = vand.u32 4294901760, %v2935_v36 }
  0x80   : > { %1020 = vmatpush1.msra.mxu1 %v2468_v31  ;;  %1053 = vmatprep.mubr.f32.mxu1 %v3546_v38  ;;  %3618 = vst [vmem:[#allocation12_spill] sm:$0xff] %v2962_v50  ;;  %v160_v31 = vld [vmem:[%s3385_s0 + $0x90] sm:$0xff] }
  0x81   : > { %1076 = vmatpush1.msra.mxu0 %v2747_v14  ;;  %1055 = vmatmul.mubr.f32.vlgmr.msra.gmra.mxu1 %v3608_v48  ;;  %v3007_v35 = vand.u32 4294901760, %v160_v31  ;;  %v3023_v14 = vsub.f32 %v169_v25, %v2948_v12  ;;  %v152_v25 = vld [vmem:[%s3385_s0 + $0x50] sm:$0xff] }
  0x82   : > { %1078 = vmatprep.subr.mxu0 %v2792_v46  ;;  %1174 = vmatprep.subr.mxu1 %v1173_v34  ;;  %v1227_v34 = vand.u32 4294901760, %v2946_v4  ;;  %v3005_v46 = vand.u32 4294901760, %v164_v3  ;;  %v3020_v4 = vand.u32 4294901760, %v161_v19 }
  0x83   : > { %1080 = vmatpush1.msra.mxu0 %v2784_v28  ;;  %1180 = vmatpush1.msra.mxu1 %v3620_v7  ;;  %3622 = vst [vmem:[#allocation14_spill] sm:$0xff] %v3007_v35  ;;  %v1221_v28 = vand.u32 4294901760, %v2959_v0  ;;  %v3018_v7 = vsub.f32 %v2915_v17, %v3623_v33  ;;  %3624 = vst [vmem:[#allocation15_spill] sm:$0xff] %v3023_v14  ;;  %v3626_v0 = vand.u32 4294901760, %v2888_v15  ;;  %v3035_v33 = vand.u32 4294901760, %v156_v10 }
  0x84   : > { %3621 = vst [vmem:[#allocation24_spill] sm:$0xff] %v3005_v46  ;;  %1082 = vmatprep.subr.mxu0 %v2812_v5  ;;  %1186 = vmatprep.subr.mxu1 %v1185_v29  ;;  %v1233_v5 = vand.u32 4294901760, %v2976_v30  ;;  %v1239_v29 = vand.u32 4294901760, %v2984_v56  ;;  %v3044_v30 = vsub.f32 %v2935_v36, %v3627_v16  ;;  %v3046_v56 = vand.u32 4294901760, %v157_v23  ;;  %v148_v36 = vld [vmem:[%s3385_s0 + $0x30] sm:$0xff] }
  0x85   : > { %1084 = vmatpush1.msra.mxu0 %v2794_v60  ;;  %1192 = vmatpush1.msra.mxu1 %v3625_v24  ;;  %v3033_v20 = vsub.f32 %v2888_v15, %v3626_v0  ;;  %v153_v0 = vld [vmem:[%s3385_s0 + $0x58] sm:$0xff]  ;;  %v3053_v60 = vsub.f32 %v165_v53, %v2992_v32  ;;  %v3060_v16 = vsub.f32 %v160_v31, %v3007_v35  ;;  %v1245_v53 = vand.u32 4294901760, %v3018_v7 }
  0x86   : > { %1086 = vmatprep.subr.mxu0 %v2847_v2  ;;  %1198 = vmatprep.subr.mxu1 %v1197_v57  ;;  %v3057_v57 = vsub.f32 %v164_v3, %v3005_v46  ;;  %v3629_v2 = vand.u32 4294901760, %v2941_v54  ;;  %v149_v3 = vld [vmem:[%s3385_s0 + $0x38] sm:$0xff]  ;;  %v3075_v31 = vsub.f32 %v161_v19, %v3020_v4  ;;  %v3082_v7 = vand.u32 4294901760, %v153_v0 }
  0x87   : > { %1088 = vmatpush1.msra.mxu0 %v2836_v49  ;;  %1204 = vmatpush1.msra.mxu1 %v1203_v61  ;;  %3628 = vst [vmem:[#allocation26_spill] sm:$0xff] %v3060_v16  ;;  %v3069_v61 = vand.u32 4294901760, %v152_v25  ;;  %v1257_v19 = vand.u32 4294901760, %v3044_v30  ;;  %v3098_v49 = vsub.f32 %v157_v23, %v3046_v56  ;;  %v3632_v23 = vand.u32 4294901760, %v3023_v14 }
  0x88   : > { %v1262_v24 = vsub.f32 %v2941_v54, %v3629_v2  ;;  %1090 = vmatprep.subr.mxu0 %v2879_v51  ;;  %1210 = vmatprep.subr.mxu1 %v1209_v59  ;;  %v1251_v2 = vand.u32 4294901760, %v3033_v20  ;;  %v3080_v59 = vsub.f32 %v156_v10, %v3035_v33  ;;  %v3104_v51 = vand.u32 4294901760, %v149_v3  ;;  %v144_v10 = vld [vmem:[%s3385_s0 + $0x10] sm:$0xff] }
  0x89   : > { %1092 = vmatpush1.msra.mxu0 %v2895_v18  ;;  %1216 = vmatpush1.msra.mxu1 %v1215_v42  ;;  %v3630_v42 = vand.u32 4294901760, %v2996_v63  ;;  %v145_v18 = vld [vmem:[%s3385_s0 + $0x18] sm:$0xff] }
  0x8a   : > { %1094 = vmatprep.subr.mxu0 %v2932_v11  ;;  %1222 = vmatprep.subr.mxu1 %v1221_v28  ;;  %v1263_v11 = vand.u32 4294901760, %v1262_v24  ;;  %v3631_v28 = vand.u32 4294901760, %v2962_v50  ;;  %v3115_v24 = vsub.f32 %v152_v25, %v3069_v61 }
  0x8b   : > { %v1268_v20 = vsub.f32 %v2996_v63, %v3630_v42  ;;  %1096 = vmatpush1.msra.mxu0 %v2909_v37  ;;  %1228 = vmatpush1.msra.mxu1 %v1227_v34  ;;  %v1280_v34 = vsub.f32 %v3023_v14, %v3632_v23  ;;  %v3117_v37 = vand.u32 4294901760, %v148_v36  ;;  %v3634_v42 = vand.u32 4294901760, %v2979_v40 }
  0x8c   : > { %v1274_v30 = vsub.f32 %v2962_v50, %v3631_v28  ;;  %1098 = vmatprep.subr.mxu0 %v2948_v12  ;;  %1234 = vmatprep.subr.mxu1 %v1233_v5  ;;  %3633 = vst [vmem:[#allocation27_spill] sm:$0xff] %v3115_v24  ;;  %v3124_v12 = vand.u32 4294901760, %v145_v18  ;;  %v3128_v23 = vsub.f32 %v153_v0, %v3082_v7  ;;  %v3635_v28 = vand.u32 4294901760, %v3053_v60 }
  0x8d   : > { %1100 = vmatpush1.msra.mxu0 %v2921_v26  ;;  %1240 = vmatpush1.msra.mxu1 %v1239_v29  ;;  %v1286_v50 = vsub.f32 %v2979_v40, %v3634_v42  ;;  %v1269_v25 = vand.u32 4294901760, %v1268_v20  ;;  %v3134_v29 = vand.u32 4294901760, %v144_v10  ;;  %v3636_v5 = vand.u32 4294901760, %v3057_v57 }
  0x8e   : > { %1102 = vmatprep.subr.mxu0 %v2992_v32  ;;  %1246 = vmatprep.subr.mxu1 %v1245_v53  ;;  %v1292_v26 = vsub.f32 %v3053_v60, %v3635_v28  ;;  %v1275_v42 = vand.u32 4294901760, %v1274_v30  ;;  %v3142_v32 = vsub.f32 %v149_v3, %v3104_v51  ;;  %v1281_v53 = vand.u32 4294901760, %v1280_v34 }
  0x8f   : > { %1104 = vmatpush1.msra.mxu0 %v3005_v46  ;;  %1252 = vmatpush1.msra.mxu1 %v1251_v2  ;;  %v1298_v0 = vsub.f32 %v3057_v57, %v3636_v5  ;;  %v3146_v20 = vsub.f32 %v148_v36, %v3117_v37  ;;  %v3637_v28 = vand.u32 4294901760, %v3075_v31  ;;  %v1287_v30 = vand.u32 4294901760, %v1286_v50 }
  0x90   : > { %1106 = vmatprep.subr.mxu0 %v3020_v4  ;;  %1258 = vmatprep.subr.mxu1 %v1257_v19  ;;  %v3638_v3 = vand.u32 4294901760, %v3060_v16  ;;  %v3158_v34 = vsub.f32 %v145_v18, %v3124_v12  ;;  %v1293_v36 = vand.u32 4294901760, %v1292_v26  ;;  %v3640_v2 = vand.u32 4294901760, %v3098_v49 }
  0x91   : > { %v1304_v14 = vsub.f32 %v3075_v31, %v3637_v28  ;;  %1108 = vmatpush1.msra.mxu0 %v3007_v35  ;;  %1264 = vmatpush1.msra.mxu1 %v1263_v11  ;;  %v3162_v28 = vsub.f32 %v144_v10, %v3134_v29  ;;  %v3507_v18 = vand.u32 4294901760, %v3142_v32  ;;  %v3641_v26 = vand.u32 4294901760, %v3080_v59 }
  0x92   : > { %v1310_v5 = vsub.f32 %v3060_v16, %v3638_v3  ;;  %1110 = vmatprep.subr.mxu0 %v3046_v56  ;;  %1270 = vmatprep.subr.mxu1 %v1269_v25  ;;  %v1316_v11 = vsub.f32 %v3098_v49, %v3640_v2  ;;  %v1299_v3 = vand.u32 4294901760, %v1298_v0  ;;  %v3642_v50 = vand.u32 4294901760, %v3128_v23 }
  0x93   : > { %3639 = vst [vmem:[#allocation28_spill] sm:$0xff] %v3162_v28  ;;  %1112 = vmatpush1.msra.mxu0 %v3035_v33  ;;  %1276 = vmatpush1.msra.mxu1 %v1275_v42  ;;  %v1305_v25 = vand.u32 4294901760, %v1304_v14  ;;  %v1322_v10 = vsub.f32 %v3080_v59, %v3641_v26  ;;  %v3506_v0 = vand.u32 4294901760, %v3158_v34  ;;  %v3505_v19 = vand.u32 4294901760, %v3162_v28 }
  0x94   : > { %1114 = vmatprep.subr.mxu0 %v3082_v7  ;;  %1282 = vmatprep.subr.mxu1 %v1281_v53  ;;  %v1311_v2 = vand.u32 4294901760, %v1310_v5  ;;  %v1328_v42 = vsub.f32 %v3128_v23, %v3642_v50  ;;  %v1317_v14 = vand.u32 4294901760, %v1316_v11  ;;  %v3643_v53 = vand.u32 4294901760, %v3115_v24 }
  0x95   : > { %1116 = vmatpush1.msra.mxu0 %v3069_v61  ;;  %1288 = vmatpush1.msra.mxu1 %v1287_v30  ;;  %v1340_v30 = vsub.f32 %v3142_v32, %v3507_v18  ;;  %v1323_v5 = vand.u32 4294901760, %v1322_v10  ;;  %v3645_v10 = vld [vmem:[#allocation25_spill] sm:$0xff]  ;;  %v3661_v18 = vld [vmem:[#allocation23_spill] sm:$0xff] }
  0x96   : > { %1118 = vmatprep.subr.mxu0 %v3104_v51  ;;  %1294 = vmatprep.subr.mxu1 %v1293_v36  ;;  %v1334_v26 = vsub.f32 %v3115_v24, %v3643_v53  ;;  %v3644_v36 = vand.u32 4294901760, %v3146_v20  ;;  %v1329_v50 = vand.u32 4294901760, %v1328_v42 }
  0x97   : > { %1120 = vmatpush1.msra.mxu0 %v3117_v37  ;;  %1300 = vmatpush1.msra.mxu1 %v1299_v3  ;;  %v1352_v3 = vsub.f32 %v3158_v34, %v3506_v0  ;;  %v3660_v0 = vld [vmem:[#allocation16_spill] sm:$0xff] }
  0x98   : > { %1122 = vmatprep.subr.mxu0 %v3124_v12  ;;  %1306 = vmatprep.subr.mxu1 %v1305_v25  ;;  %v1346_v11 = vsub.f32 %v3146_v20, %v3644_v36  ;;  %v1335_v53 = vand.u32 4294901760, %v1334_v26  ;;  %v1358_v25 = vsub.f32 %v3162_v28, %v3505_v19  ;;  %v1341_v36 = vand.u32 4294901760, %v1340_v30  ;;  %v3646_v26 = vld [vmem:[#allocation19_spill] sm:$0xff]  ;;  %v3659_v19 = vld [vmem:[#allocation18_spill] sm:$0xff] }
  0x99   : > { %1124 = vmatpush1.msra.mxu0 %v3134_v29  ;;  %1312 = vmatpush1.msra.mxu1 %v1311_v2  ;;  %v1353_v42 = vand.u32 4294901760, %v1352_v3  ;;  %v3647_v30 = vld [vmem:[#allocation3_spill] sm:$0xff]  ;;  %v3651_v3 = vld [vmem:[#allocation4_spill] sm:$0xff] }
  0x9a   : > { %1157 = vmatprep.mubr.f32.mxu0 %v3546_v38  ;;  %1318 = vmatprep.subr.mxu1 %v1317_v14  ;;  %v1347_v2 = vand.u32 4294901760, %v1346_v11  ;;  %v1359_v14 = vand.u32 4294901760, %v1358_v25  ;;  %v3649_v11 = vld [vmem:[#allocation5_spill] sm:$0xff]  ;;  %v3653_v25 = vld [vmem:[#allocation7_spill] sm:$0xff] }
  0x9b   : > { %1403 = vmatprep.subr.mxu0 %v2726_v47  ;;  %1163 = vmatmul.mubr.f32.vlgmr.msra.gmra.mxu0 %v3645_v10  ;;  %v3654_v10 = vld [vmem:[#allocation6_spill] sm:$0xff] }
  0x9c   : > { %1324 = vmatpush1.msra.mxu1 %v1323_v5  ;;  %1406 = vmatpush1.msra.mxu0 %v2718_v55  ;;  %v3648_v5 = vld [vmem:[#allocation2_spill] sm:$0xff] }
  0x9d   : > { %1330 = vmatprep.subr.mxu1 %v1329_v50  ;;  %1409 = vmatprep.subr.mxu0 %v2761_v45  ;;  %v3650_v50 = vld [vmem:[#allocation12_spill] sm:$0xff] }
  0x9e   : > { %1336 = vmatpush1.msra.mxu1 %v1335_v53  ;;  %1412 = vmatpush1.msra.mxu0 %v2732_v62  ;;  %v3652_v53 = vld [vmem:[#allocation15_spill] sm:$0xff] }
  0x9f   : > { %1342 = vmatprep.subr.mxu1 %v1341_v36  ;;  %1415 = vmatprep.subr.mxu0 %v2776_v9  ;;  %v3655_v36 = vld [vmem:[#allocation9_spill] sm:$0xff] }
  0xa0   : > { %1348 = vmatpush1.msra.mxu1 %v1347_v2  ;;  %1418 = vmatpush1.msra.mxu0 %v2782_v39  ;;  %v3656_v2 = vld [vmem:[#allocation8_spill] sm:$0xff] }
  0xa1   : > { %1354 = vmatprep.subr.mxu1 %v1353_v42  ;;  %1421 = vmatprep.subr.mxu0 %v2828_v43  ;;  %v3657_v42 = vld [vmem:[#allocation10_spill] sm:$0xff] }
  0xa2   : > { %1360 = vmatpush1.msra.mxu1 %v1359_v14  ;;  %1393 = vmatprep.mubr.f32.mxu1 %v3546_v38  ;;  %v3658_v14 = vld [vmem:[#allocation11_spill] sm:$0xff] }
  0xa3   : > { %1424 = vmatpush1.msra.mxu0 %v2790_v41  ;;  %1395 = vmatmul.mubr.f32.vlgmr.msra.gmra.mxu1 %v3608_v48  ;;  %v3662_v48 = vld [vmem:[#allocation17_spill] sm:$0xff] }
  0xa4   : > { %1427 = vmatprep.subr.mxu0 %v2854_v52  ;;  %1539 = vmatprep.subr.mxu1 %v2690_v1 }
  0xa5   : > { %1430 = vmatpush1.msra.mxu0 %v2834_v8  ;;  %1541 = vmatpush1.msra.mxu1 %v2692_v13 }
  0xa6   : > { %1433 = vmatprep.subr.mxu0 %v2869_v22  ;;  %1543 = vmatprep.subr.mxu1 %v2720_v58 }
  0xa7   : > { %1436 = vmatpush1.msra.mxu0 %v2845_v27  ;;  %1545 = vmatpush1.msra.mxu1 %v2700_v44 }
  0xa8   : > { %1439 = vmatprep.subr.mxu0 %v2915_v17  ;;  %1547 = vmatprep.subr.mxu1 %v2734_v6 }
  0xa9   : > { %1442 = vmatpush1.msra.mxu0 %v2888_v15  ;;  %1549 = vmatpush1.msra.mxu1 %v2739_v21 }
  0xaa   : > { %1445 = vmatprep.subr.mxu0 %v3646_v26  ;;  %1551 = vmatprep.subr.mxu1 %v3647_v30 }
  0xab   : > { %1448 = vmatpush1.msra.mxu0 %v2941_v54  ;;  %1553 = vmatpush1.msra.mxu1 %v3648_v5 }
  0xac   : > { %1451 = vmatprep.subr.mxu0 %v2996_v63  ;;  %1555 = vmatprep.subr.mxu1 %v3649_v11 }
  0xad   : > { %1454 = vmatpush1.msra.mxu0 %v3650_v50  ;;  %1557 = vmatpush1.msra.mxu1 %v3651_v3 }
  0xae   : > { %1457 = vmatprep.subr.mxu0 %v3652_v53  ;;  %1559 = vmatprep.subr.mxu1 %v3653_v25 }
  0xaf   : > { %1460 = vmatpush1.msra.mxu0 %v2979_v40  ;;  %1561 = vmatpush1.msra.mxu1 %v3654_v10 }
  0xb0   : > { %1463 = vmatprep.subr.mxu0 %v3053_v60  ;;  %1563 = vmatprep.subr.mxu1 %v3655_v36 }
  0xb1   : > { %1466 = vmatpush1.msra.mxu0 %v3057_v57  ;;  %1565 = vmatpush1.msra.mxu1 %v3656_v2 }
  0xb2   : > { %1469 = vmatprep.subr.mxu0 %v3075_v31  ;;  %1567 = vmatprep.subr.mxu1 %v3657_v42 }
  0xb3   : > { %1472 = vmatpush1.msra.mxu0 %v3060_v16  ;;  %1569 = vmatpush1.msra.mxu1 %v3658_v14  ;;  %v3663_v16 = vld [vmem:[#allocation13_spill] sm:$0xff] }
  0xb4   : > { %1475 = vmatprep.subr.mxu0 %v3098_v49  ;;  %1571 = vmatprep.subr.mxu1 %v3659_v19 }
  0xb5   : > { %1478 = vmatpush1.msra.mxu0 %v3080_v59  ;;  %1573 = vmatpush1.msra.mxu1 %v3660_v0 }
  0xb6   : > { %1481 = vmatprep.subr.mxu0 %v3128_v23  ;;  %1575 = vmatprep.subr.mxu1 %v3661_v18 }
  0xb7   : > { %1484 = vmatpush1.msra.mxu0 %v3115_v24  ;;  %1577 = vmatpush1.msra.mxu1 %v3662_v48  ;;  %v3664_v24 = vld [vmem:[#allocation21_spill] sm:$0xff] }
  0xb8   : > { %1487 = vmatprep.subr.mxu0 %v3142_v32  ;;  %1579 = vmatprep.subr.mxu1 %v3663_v16  ;;  %v3665_v16 = vand.u32 4294901760, %v2726_v47  ;;  %v3669_v47 = vand.u32 4294901760, %v2776_v9  ;;  %v3674_v9 = vand.u32 4294901760, %v2854_v52  ;;  %v3678_v52 = vand.u32 4294901760, %v2915_v17 }
  0xb9   : > { %1490 = vmatpush1.msra.mxu0 %v3146_v20  ;;  %1581 = vmatpush1.msra.mxu1 %v3005_v46  ;;  %v3666_v46 = vand.u32 4294901760, %v2718_v55  ;;  %v3670_v55 = vand.u32 4294901760, %v2782_v39  ;;  %v3675_v39 = vand.u32 4294901760, %v2834_v8  ;;  %v3687_v17 = vand.u32 4294901760, %v3057_v57 }
  0xba   : > { %1493 = vmatprep.subr.mxu0 %v3158_v34  ;;  %1583 = vmatprep.subr.mxu1 %v3020_v4  ;;  %v3688_v8 = vand.u32 4294901760, %v3075_v31  ;;  %v3698_v31 = vand.u32 4294901760, %v3146_v20 }
  0xbb   : > { %1496 = vmatpush1.msra.mxu0 %v3162_v28  ;;  %1529 = vmatprep.mubr.f32.mxu0 %v3546_v38  ;;  %v3667_v28 = vand.u32 4294901760, %v2761_v45  ;;  %v3671_v45 = vand.u32 4294901760, %v2828_v43  ;;  %v3676_v43 = vand.u32 4294901760, %v2869_v22 }
  0xbc   : > { %1585 = vmatpush1.msra.mxu1 %v3007_v35  ;;  %1532 = vmatmul.mubr.f32.vlgmr.msra.gmra.mxu0 %v3664_v24  ;;  %v3668_v35 = vand.u32 4294901760, %v2732_v62  ;;  %v3672_v62 = vand.u32 4294901760, %v2790_v41  ;;  %v3677_v41 = vand.u32 4294901760, %v2845_v27  ;;  %v3689_v27 = vld [vmem:[#allocation26_spill] sm:$0xff]  ;;  %v3700_v24 = vand.u32 4294901760, %v3158_v34 }
  0xbd   : > { %1587 = vmatprep.subr.mxu1 %v3046_v56  ;;  %1647 = vmatprep.subr.mxu0 %v3665_v16  ;;  %v3690_v22 = vand.u32 4294901760, %v3689_v27  ;;  %v3697_v16 = vld [vmem:[#allocation13_spill] sm:$0xff] }
  0xbe   : > { %1589 = vmatpush1.msra.mxu1 %v3035_v33  ;;  %1651 = vmatpush1.msra.mxu0 %v3666_v46  ;;  %v3673_v46 = vld [vmem:[#allocation22_spill] sm:$0xff] }
  0xbf   : > { %1591 = vmatprep.subr.mxu1 %v3082_v7  ;;  %1655 = vmatprep.subr.mxu0 %v3667_v28 }
  0xc0   : > { %1593 = vmatpush1.msra.mxu1 %v3069_v61  ;;  %1659 = vmatpush1.msra.mxu0 %v3668_v35  ;;  %v3694_v35 = vld [vmem:[#allocation27_spill] sm:$0xff] }
  0xc1   : > { %1595 = vmatprep.subr.mxu1 %v3104_v51  ;;  %1663 = vmatprep.subr.mxu0 %v3669_v47  ;;  %v3695_v57 = vand.u32 4294901760, %v3694_v35 }
  0xc2   : > { %1597 = vmatpush1.msra.mxu1 %v3117_v37  ;;  %1667 = vmatpush1.msra.mxu0 %v3670_v55 }
  0xc3   : > { %1599 = vmatprep.subr.mxu1 %v3124_v12  ;;  %1671 = vmatprep.subr.mxu0 %v3671_v45 }
  0xc4   : > { %1601 = vmatpush1.msra.mxu1 %v3134_v29  ;;  %1634 = vmatprep.mubr.f32.mxu1 %v3546_v38 }
  0xc5   : > { %1675 = vmatpush1.msra.mxu0 %v3672_v62  ;;  %1638 = vmatmul.mubr.f32.vlgmr.msra.gmra.mxu1 %v3673_v46 }
  0xc6   : > { %1679 = vmatprep.subr.mxu0 %v3674_v9  ;;  %1813 = vmatprep.subr.mxu1 %v2690_v1  ;;  %v3679_v1 = vand.u32 4294901760, %v2888_v15  ;;  %v3692_v15 = vand.u32 4294901760, %v3080_v59  ;;  %v3699_v59 = vld [vmem:[#allocation24_spill] sm:$0xff] }
  0xc7   : > { %1683 = vmatpush1.msra.mxu0 %v3675_v39  ;;  %1815 = vmatpush1.msra.mxu1 %v2692_v13  ;;  %v3680_v13 = vand.u32 4294901760, %v3646_v26 }
  0xc8   : > { %1687 = vmatprep.subr.mxu0 %v3676_v43  ;;  %1817 = vmatprep.subr.mxu1 %v2720_v58  ;;  %v3681_v58 = vand.u32 4294901760, %v2941_v54  ;;  %v3685_v54 = vand.u32 4294901760, %v2979_v40  ;;  %v3693_v40 = vand.u32 4294901760, %v3128_v23  ;;  %v3701_v23 = vld [vmem:[#allocation28_spill] sm:$0xff] }
  0xc9   : > { %1691 = vmatpush1.msra.mxu0 %v3677_v41  ;;  %1819 = vmatpush1.msra.mxu1 %v2700_v44  ;;  %v3682_v44 = vand.u32 4294901760, %v2996_v63  ;;  %v3686_v63 = vand.u32 4294901760, %v3053_v60  ;;  %v3691_v60 = vand.u32 4294901760, %v3098_v49  ;;  %v3696_v49 = vand.u32 4294901760, %v3142_v32  ;;  %v3704_v32 = vld [vmem:[#allocation20_spill] sm:$0xff] }
  0xca   : > { %1695 = vmatprep.subr.mxu0 %v3678_v52  ;;  %1821 = vmatprep.subr.mxu1 %v2734_v6  ;;  %v3683_v6 = vand.u32 4294901760, %v3650_v50 }
  0xcb   : > { %1699 = vmatpush1.msra.mxu0 %v3679_v1  ;;  %1823 = vmatpush1.msra.mxu1 %v2739_v21  ;;  %v3684_v21 = vand.u32 4294901760, %v3652_v53 }
  0xcc   : > { %1703 = vmatprep.subr.mxu0 %v3680_v13  ;;  %1825 = vmatprep.subr.mxu1 %v3647_v30 }
  0xcd   : > { %1707 = vmatpush1.msra.mxu0 %v3681_v58  ;;  %1827 = vmatpush1.msra.mxu1 %v3648_v5 }
  0xce   : > { %1711 = vmatprep.subr.mxu0 %v3682_v44  ;;  %1829 = vmatprep.subr.mxu1 %v3649_v11 }
  0xcf   : > { %1715 = vmatpush1.msra.mxu0 %v3683_v6  ;;  %1831 = vmatpush1.msra.mxu1 %v3651_v3 }
  0xd0   : > { %1719 = vmatprep.subr.mxu0 %v3684_v21  ;;  %1833 = vmatprep.subr.mxu1 %v3653_v25 }
  0xd1   : > { %1723 = vmatpush1.msra.mxu0 %v3685_v54  ;;  %1835 = vmatpush1.msra.mxu1 %v3654_v10 }
  0xd2   : > { %1727 = vmatprep.subr.mxu0 %v3686_v63  ;;  %1837 = vmatprep.subr.mxu1 %v3655_v36 }
  0xd3   : > { %1731 = vmatpush1.msra.mxu0 %v3687_v17  ;;  %1839 = vmatpush1.msra.mxu1 %v3656_v2 }
  0xd4   : > { %1735 = vmatprep.subr.mxu0 %v3688_v8  ;;  %1841 = vmatprep.subr.mxu1 %v3657_v42 }
  0xd5   : > { %1739 = vmatpush1.msra.mxu0 %v3690_v22  ;;  %1843 = vmatpush1.msra.mxu1 %v3658_v14 }
  0xd6   : > { %1743 = vmatprep.subr.mxu0 %v3691_v60  ;;  %1845 = vmatprep.subr.mxu1 %v3659_v19  ;;  %v3702_v19 = vand.u32 4294901760, %v3701_v23 }
  0xd7   : > { %1747 = vmatpush1.msra.mxu0 %v3692_v15  ;;  %1847 = vmatpush1.msra.mxu1 %v3660_v0 }
  0xd8   : > { %1751 = vmatprep.subr.mxu0 %v3693_v40  ;;  %1849 = vmatprep.subr.mxu1 %v3661_v18 }
  0xd9   : > { %1755 = vmatpush1.msra.mxu0 %v3695_v57  ;;  %1851 = vmatpush1.msra.mxu1 %v3662_v48  ;;  %v3703_v48 = vld [vmem:[#allocation14_spill] sm:$0xff] }
  0xda   : > { %1759 = vmatprep.subr.mxu0 %v3696_v49  ;;  %1853 = vmatprep.subr.mxu1 %v3697_v16 }
  0xdb   : > { %1763 = vmatpush1.msra.mxu0 %v3698_v31  ;;  %1855 = vmatpush1.msra.mxu1 %v3699_v59 }
  0xdc   : > { %1767 = vmatprep.subr.mxu0 %v3700_v24  ;;  %1857 = vmatprep.subr.mxu1 %v3020_v4 }
  0xdd   : > { %1771 = vmatpush1.msra.mxu0 %v3702_v19  ;;  %1804 = vmatprep.mubr.f32.mxu0 %v3546_v38 }
  0xde   : > { %1859 = vmatpush1.msra.mxu1 %v3703_v48  ;;  %1806 = vmatmul.mubr.f32.vlgmr.msra.gmra.mxu0 %v3704_v32 }
  0xdf   : > { %1861 = vmatprep.subr.mxu1 %v3046_v56  ;;  %1908 = vmatprep.mubr.f32.mxu1 %v3546_v38 }
  0xe0   : > { %1863 = vmatpush1.msra.mxu1 %v3035_v33 }
  0xe1   : > { %1865 = vmatprep.subr.mxu1 %v3082_v7 }
  0xe2   : > { %1867 = vmatpush1.msra.mxu1 %v3069_v61 }
  0xe3   : > { %1869 = vmatprep.subr.mxu1 %v3104_v51 }
  0xe4   : > { %1871 = vmatpush1.msra.mxu1 %v3117_v37 }
  0xe5   : > { %1873 = vmatprep.subr.mxu1 %v3124_v12 }
  0xe6   : > { %1875 = vmatpush1.msra.mxu1 %v3134_v29 }
  0xe7   : > { %1910 = vmatmul.mubr.f32.vlgmr.msra.gmra.mxu1 %v3704_v32 }
  0xf6   : > { %v309_v4 = vpop.f32.mrf.mxu0 }
  0xf8   : > { %v311_v56 = vpop.f32.mrf.mxu0 }
  0xfd   : > { %v541_v38 = vpop.f32.mrf.mxu1 }
  0xfe   : > { %v542_v28 = vadd.f32 %v541_v38, %v309_v4 }
  0xff   : > { %v543_v33 = vpop.f32.mrf.mxu1 }
 0x100   : > { %v544_v18 = vadd.f32 %v543_v33, %v311_v56 }
 0x116   : > { %v678_v20 = vpop.f32.mrf.mxu0 }
 0x117   : > { %v679_v51 = vadd.f32 %v678_v20, %v542_v28 }
 0x118   : > { %v680_v34 = vpop.f32.mrf.mxu0 }
 0x119   : > { %v681_v37 = vadd.f32 %v680_v34, %v544_v18 }
 0x11f   : > { %v784_v7 = vpop.f32.mrf.mxu1 }
 0x120   : > { %v785_v26 = vadd.f32 %v784_v7, %v679_v51 }
 0x121   : > { %v786_v0 = vpop.f32.mrf.mxu1 }
 0x122   : > { %v787_v29 = vadd.f32 %v786_v0, %v681_v37 }
 0x139   : > { %v952_v61 = vpop.f32.mrf.mxu0 }
 0x13a   : > { %v953_v30 = vadd.f32 %v952_v61, %v785_v26 }
 0x13b   : > { %v954_v12 = vpop.f32.mrf.mxu0 }
 0x13c   : > { %v955_v11 = vadd.f32 %v954_v12, %v787_v29 }
 0x141   : > { %v1056_v5 = vpop.f32.mrf.mxu1 }
 0x142   : > { %v1057_v50 = vadd.f32 %v1056_v5, %v953_v30 }
 0x143   : > { %v1058_v3 = vpop.f32.mrf.mxu1 }
 0x144   : > { %1916 = vst [vmem:[%s3376_s17] sm:$0xff] %v1057_v50  ;;  %v1059_v53 = vadd.f32 %v1058_v3, %v955_v11 }
 0x146   : > { %1917 = vst [vmem:[%s3376_s17 + $0x8] sm:$0xff] %v1059_v53 }
 0x15b   : > { %v1164_v25 = vpop.f32.mrf.mxu0 }
 0x15d   : > { %v1166_v10 = vpop.f32.mrf.mxu0 }
 0x163   : > { %v1396_v36 = vpop.f32.mrf.mxu1 }
 0x164   : > { %v1397_v55 = vadd.f32 %v1396_v36, %v1164_v25 }
 0x165   : > { %v1398_v42 = vpop.f32.mrf.mxu1 }
 0x166   : > { %v1399_v62 = vadd.f32 %v1398_v42, %v1166_v10 }
 0x17c   : > { %v1533_v2 = vpop.f32.mrf.mxu0 }
 0x17d   : > { %v1534_v46 = vadd.f32 %v1533_v2, %v1397_v55 }
 0x17e   : > { %v1535_v14 = vpop.f32.mrf.mxu0 }
 0x17f   : > { %v1536_v39 = vadd.f32 %v1535_v14, %v1399_v62 }
 0x185   : > { %v1639_v47 = vpop.f32.mrf.mxu1 }
 0x186   : > { %v1640_v43 = vadd.f32 %v1639_v47, %v1534_v46 }
 0x187   : > { %v1641_v9 = vpop.f32.mrf.mxu1 }
 0x188   : > { %v1642_v52 = vadd.f32 %v1641_v9, %v1536_v39 }
 0x19e   : > { %v1807_v45 = vpop.f32.mrf.mxu0 }
 0x19f   : > { %v1808_v1 = vadd.f32 %v1807_v45, %v1640_v43 }
 0x1a0   : > { %v1809_v41 = vpop.f32.mrf.mxu0 }
 0x1a1   : > { %v1810_v58 = vadd.f32 %v1809_v41, %v1642_v52 }
 0x1a7   : > { %v1911_v13 = vpop.f32.mrf.mxu1 }
 0x1a8   : > { %v1912_v44 = vadd.f32 %v1911_v13, %v1808_v1 }
 0x1a9   : > { %v1913_v6 = vpop.f32.mrf.mxu1 }
 0x1aa   : > { %1918 = vst [vmem:[%s3376_s17 + $0x10] sm:$0xff] %v1912_v44  ;;  %v1914_v21 = vadd.f32 %v1913_v6, %v1810_v58 }
 0x1ac   : > { %1919 = vst [vmem:[%s3376_s17 + $0x18] sm:$0xff] %v1914_v21 }
 0x1ad PF: > { %s12_s9 = sadd.s32 1, %s2001_s9  }
 0x1ae   : > { %p9_p4 = scmp.ge.s32.totalorder %s12_s9, 4  }
 0x1b0   :  { %11 = sbr.rel (!%p9_p4) target bundleno = 1 (0x1), region = 58 }

</bundles_post_ra>
